<compile_context>
chip_gen: v7x
topology: tpu7x:2x2x1
jax: 0.10.0
libtpu: 0.0.40
codegen_flags: <defaults>
</compile_context>

<pallas_src>
import math

import jax
import jax.numpy as jnp
import numpy as np
from jax import lax
from jax.experimental import pallas as pl
from jax.experimental.pallas import tpu as pltpu

# ----------------------------- problem sizes --------------------------------
C = 4          # num_chains
B = 8          # batch per chain
H = 32         # hidden_dim
NH = 4         # num_heads (cross_chain_attention_heads)
HD = H // NH   # head_dim
LN_EPS = 1e-5


# ------------------------------- kernel -------------------------------------
def make_cross_chain_kernel(num_chains, hidden_dim):
    C_ = num_chains
    H_ = hidden_dim
    CH = C_ * H_  # lane width of every slab (C*H = 128 in the demo)

    def kernel(xa_ref, c_ref, out_ref):
        # xa_ref : (2, B, CH)  [0] = raw feature slab, [1] = additive slab
        #                          (chain embedding + optional layer2 features)
        # c_ref  : (CH, 9*CH)  packed constants:
        #   [:,0:3CH]   block-diag [Wq|Wk|Wv]      [:,3CH:4CH] block-diag Wo
        #   [:,4CH:5CH] head-sum+broadcast (scale) [:,5CH:6CH] per-chain 1/H avg
        #   [0:8,6CH:9CH] rows: r0=[bq|bk|bv] tiled, r1=[bo_term|gamma|beta],
        #                 r2..r2+C-1 = chain-mixing row per roll step (cols 0:CH)
        # out_ref: (B, CH)     lane-dense output slab
        x = xa_ref[0]                              # (B, CH) raw features
        cf = x + xa_ref[1]                         # (B, CH) chain features

        w_qkv = c_ref[:, 0:3 * CH]                 # (CH, 3CH)
        w_o = c_ref[:, 3 * CH:4 * CH]              # (CH, CH)
        seg_e = c_ref[:, 4 * CH:5 * CH]            # (CH, CH)
        avg_m = c_ref[:, 5 * CH:6 * CH]            # (CH, CH)
        rows = c_ref[0:8, 6 * CH:9 * CH]           # (8, 3CH)
        b_qkv = rows[0:1, :]                       # (1, 3CH) tiled [bq|bk|bv]
        bo_t = rows[1:2, 0:CH]                     # (1, CH)  bo * sum_c mix[i,c]
        gamma_t = rows[1:2, CH:2 * CH]             # (1, CH)  gamma tiled per chain
        beta_t = rows[1:2, 2 * CH:3 * CH]          # (1, CH)  beta tiled per chain
        mix_r = rows[2:2 + C_, 0:CH]               # (C, CH)  mix[i,(i-t)%C] per t

        # ---- fused lane-dense QKV projection (one MXU push, 128-aligned) ----
        qkv = jnp.dot(cf, w_qkv, preferred_element_type=jnp.float32) + b_qkv
        q = qkv[:, 0:CH]
        k = qkv[:, CH:2 * CH]
        v = qkv[:, 2 * CH:3 * CH]

        # ---- all (query-chain i, key-chain c) pairs via lane rotations ------
        # roll by t*H pairs query chain i with key chain (i - t) % C; scores are
        # broadcast over the head lanes by seg_e (scale folded in).
        scores, v_rolls = [], []
        for t in range(C_):
            kt = k if t == 0 else jnp.roll(k, t * H_, axis=1)
            vt = v if t == 0 else jnp.roll(v, t * H_, axis=1)
            v_rolls.append(vt)
            scores.append(jnp.dot(q * kt, seg_e,
                                  preferred_element_type=jnp.float32))

        # ---- softmax over key chains (the C rolled copies): dense VPU/EUP ---
        m = scores[0]
        for t in range(1, C_):
            m = jnp.maximum(m, scores[t])
        exps = [jnp.exp(scores[t] - m) for t in range(C_)]
        den = exps[0]
        for t in range(1, C_):
            den = den + exps[t]

        # ---- chain mixing folded into the (unnormalized) weights; contract V
        num = (exps[0] * mix_r[0:1, :]) * v_rolls[0]
        for t in range(1, C_):
            num = num + (exps[t] * mix_r[t:t + 1, :]) * v_rolls[t]
        ctx = num / den                             # (B, CH)

        # ---- block-diag output projection + folded bias, residual, LayerNorm
        mixed = jnp.dot(ctx, w_o, preferred_element_type=jnp.float32) + bo_t
        resid = x + mixed
        mean = jnp.dot(resid, avg_m, preferred_element_type=jnp.float32)
        cen = resid - mean
        var = jnp.dot(cen * cen, avg_m, preferred_element_type=jnp.float32)
        out_ref[...] = (cen * lax.rsqrt(var + LN_EPS)) * gamma_t + beta_t

    return kernel


# ------------------------------- wrapper -------------------------------------
def enhanced_cross_chain_attention(x_stack, chain_embeddings, params,
                                   layer2_stack=None):
    """x_stack: (C,B,H) single forward, or (N,C,B,H) batched instances."""
    squeeze = x_stack.ndim == 3
    if squeeze:
        x_stack = x_stack[None]
        if layer2_stack is not None:
            layer2_stack = layer2_stack[None]
    N_, C_, B_, H_ = x_stack.shape
    NH_ = NH
    HD_ = H_ // NH_
    CH = C_ * H_
    f32 = jnp.float32
    wq, wk, wv, wo, bq, bk, bv, bo, mix, gamma, beta = params

    # ---- features stream: (N, 2, B, C*H) lane-dense slabs -------------------
    add = jnp.broadcast_to(chain_embeddings[None, :, None, :], (N_, C_, B_, H_))
    if layer2_stack is not None:
        add = add + layer2_stack
    x_slab = x_stack.transpose(0, 2, 1, 3).reshape(N_, B_, CH)
    a_slab = add.transpose(0, 2, 1, 3).reshape(N_, B_, CH)
    xa = jnp.stack([x_slab, a_slab], axis=1)                      # (N,2,B,CH)

    # ---- constants stream (single host-built (CH, 9*CH) slab) ---------------
    eye_c = jnp.eye(C_, dtype=f32)
    blk = lambda w: jnp.kron(eye_c, w.astype(f32))                # (CH, CH)
    seg_e = jnp.kron(jnp.eye(C_ * NH_, dtype=f32),
                     jnp.ones((HD_, HD_), f32)) / math.sqrt(HD_)
    avg_m = jnp.kron(eye_c, jnp.ones((H_, H_), f32)) / H_
    big = jnp.concatenate([blk(wq), blk(wk), blk(wv), blk(wo), seg_e, avg_m],
                          axis=1)                                 # (CH, 6CH)

    row0 = jnp.concatenate([jnp.tile(bq, C_), jnp.tile(bk, C_),
                            jnp.tile(bv, C_)])                    # (3CH,)
    bo_term = (jnp.sum(mix, axis=1)[:, None] * bo[None, :]).reshape(CH)
    row1 = jnp.concatenate([bo_term, jnp.tile(gamma, C_), jnp.tile(beta, C_)])
    ii = jnp.arange(C_)
    # mix_roll[t, i*H + h] = mix[i, (i - t) % C]  (matches jnp.roll by t*H)
    mix_roll = jnp.repeat(mix[ii[None, :], (ii[None, :] - ii[:, None]) % C_],
                          H_, axis=1)                             # (C, CH)
    rows = jnp.zeros((CH, 3 * CH), f32)
    rows = rows.at[0, :].set(row0)
    rows = rows.at[1, :].set(row1)
    rows = rows.at[2:2 + C_, 0:CH].set(mix_roll)
    consts = jnp.concatenate([big, rows], axis=1)                 # (CH, 9CH)

    kernel = make_cross_chain_kernel(C_, H_)
    out_slab = pl.pallas_call(
        kernel,
        out_shape=jax.ShapeDtypeStruct((N_, B_, CH), jnp.float32),
        grid=(N_,),
        in_specs=[
            pl.BlockSpec((None, 2, B_, CH), lambda n: (n, 0, 0, 0)),
            # constants: same block for every instance -> stays VMEM-resident
            pl.BlockSpec((CH, 9 * CH), lambda n: (0, 0)),
        ],
        out_specs=pl.BlockSpec((None, B_, CH), lambda n: (n, 0, 0)),
        compiler_params=pltpu.CompilerParams(
            dimension_semantics=("parallel",)),
    )(xa, consts)

    out = out_slab.reshape(N_, B_, C_, H_).transpose(0, 2, 1, 3)  # (N,C,B,H)
    return out[0] if squeeze else out


# ----------------------------- pure-JAX reference ----------------------------
def reference(x_stack, chain_embeddings, params):
    wq, wk, wv, wo, bq, bk, bv, bo, mix, gamma, beta = params
    C_, B_, H_ = x_stack.shape
    cf = x_stack + chain_embeddings[:, None, :]
    outs = []
    for i in range(C_):
        q = cf[i] @ wq + bq                                    # (B, H)
        k = jnp.einsum("cbh,hd->cbd", cf, wk) + bk             # (C, B, H)
        v = jnp.einsum("cbh,hd->cbd", cf, wv) + bv
        qh = q.reshape(B_, NH, HD)
        kh = k.reshape(C_, B_, NH, HD)
        vh = v.reshape(C_, B_, NH, HD)
        s = jnp.einsum("bnd,cbnd->cbn", qh, kh) / math.sqrt(HD)
        a = jax.nn.softmax(s, axis=0)
        attended = (a[..., None] * vh).reshape(C_, B_, H_) @ wo + bo
        mixed = jnp.sum(attended * mix[i][:, None, None], axis=0)
        resid = x_stack[i] + mixed
        mean = resid.mean(-1, keepdims=True)
        var = ((resid - mean) ** 2).mean(-1, keepdims=True)
        outs.append((resid - mean) / jnp.sqrt(var + LN_EPS) * gamma + beta)
    return jnp.stack(outs)


# --------------------------------- main ---------------------------------------
if __name__ == "__main__":
    key = jax.random.PRNGKey(0)
    keys = jax.random.split(key, 12)

    # features: Dict[str, Tensor] with num_chains entries of shape (B, H),
    # stacked here into (C, B, H).
    x_stack = jax.random.normal(keys[0], (C, B, H), dtype=jnp.float32)

    chain_embeddings = jax.random.normal(keys[1], (C, H), dtype=jnp.float32)
    chain_mixing = jax.random.normal(keys[2], (C, C), dtype=jnp.float32)

    wq = jax.random.normal(keys[3], (H, H), dtype=jnp.float32) * 0.1
    wk = jax.random.normal(keys[4], (H, H), dtype=jnp.float32) * 0.1
    wv = jax.random.normal(keys[5], (H, H), dtype=jnp.float32) * 0.1
    wo = jax.random.normal(keys[6], (H, H), dtype=jnp.float32) * 0.1
    bq = jax.random.normal(keys[7], (H,), dtype=jnp.float32) * 0.01
    bk = jax.random.normal(keys[8], (H,), dtype=jnp.float32) * 0.01
    bv = jax.random.normal(keys[9], (H,), dtype=jnp.float32) * 0.01
    bo = jax.random.normal(keys[10], (H,), dtype=jnp.float32) * 0.01
    gamma = jnp.ones((H,), dtype=jnp.float32)
    beta = jnp.zeros((H,), dtype=jnp.float32)

    params = (wq, wk, wv, wo, bq, bk, bv, bo, chain_mixing, gamma, beta)

    # ---- single forward (matches the PyTorch module semantics) --------------
    out = enhanced_cross_chain_attention(x_stack, chain_embeddings, params)
    out = jax.block_until_ready(out)
    ref = reference(x_stack, chain_embeddings, params)
    np.testing.assert_allclose(np.asarray(out), np.asarray(ref),
                               rtol=1e-4, atol=1e-4)

    # ---- batched instances: amortizes launch cost, shards across TCs (v7x) --
    N_INST = 4
    xb = jax.random.normal(keys[11], (N_INST, C, B, H), dtype=jnp.float32)
    outb = enhanced_cross_chain_attention(xb, chain_embeddings, params)
    outb = jax.block_until_ready(outb)
    refb = jnp.stack([reference(xb[n], chain_embeddings, params)
                      for n in range(N_INST)])
    np.testing.assert_allclose(np.asarray(outb), np.asarray(refb),
                               rtol=1e-4, atol=1e-4)

    print("KERNEL_OK")
</pallas_src>

<mosaic_0001>
module attributes {stable_mosaic.version = 11 : i64} {
  func.func @kernel(%arg0: i32, %arg1: memref<1x2x8x128xf32, #tpu.memory_space<vmem>>, %arg2: memref<128x1152xf32, #tpu.memory_space<vmem>>, %arg3: memref<1x8x128xf32, #tpu.memory_space<vmem>>) attributes {dimension_semantics = [#tpu.dimension_semantics<parallel>], iteration_bounds = array<i64: 1>, scalar_prefetch = 0 : i64, scratch_operands = 0 : i64, tpu.core_type = #tpu.core_type<tc>, window_params = [{transform_indices = @transform_0, window_bounds = array<i64: 1, 2, 8, 128>}, {pipeline_mode = #tpu.pipeline_mode<synchronous>, transform_indices = @transform_1, window_bounds = array<i64: 128, 1152>}, {transform_indices = @transform_2, window_bounds = array<i64: 1, 8, 128>}]} {
    %c0 = arith.constant 0 : index
    %c0_0 = arith.constant 0 : index
    %c0_1 = arith.constant 0 : index
    %c0_2 = arith.constant 0 : index
    %0 = vector.load %arg1[%c0, %c0_0, %c0_1, %c0_2] : memref<1x2x8x128xf32, #tpu.memory_space<vmem>>, vector<1x1x8x128xf32>
    %1 = vector.shape_cast %0 : vector<1x1x8x128xf32> to vector<8x128xf32>
    %c0_3 = arith.constant 0 : index
    %c1 = arith.constant 1 : index
    %c0_4 = arith.constant 0 : index
    %c0_5 = arith.constant 0 : index
    %2 = vector.load %arg1[%c0_3, %c1, %c0_4, %c0_5] : memref<1x2x8x128xf32, #tpu.memory_space<vmem>>, vector<1x1x8x128xf32>
    %3 = vector.shape_cast %2 : vector<1x1x8x128xf32> to vector<8x128xf32>
    %4 = arith.addf %1, %3 : vector<8x128xf32>
    %c0_6 = arith.constant 0 : index
    %c0_7 = arith.constant 0 : index
    %5 = vector.load %arg2[%c0_6, %c0_7] : memref<128x1152xf32, #tpu.memory_space<vmem>>, vector<128x384xf32>
    %c0_8 = arith.constant 0 : index
    %c384 = arith.constant 384 : index
    %6 = vector.load %arg2[%c0_8, %c384] : memref<128x1152xf32, #tpu.memory_space<vmem>>, vector<128x128xf32>
    %c0_9 = arith.constant 0 : index
    %c512 = arith.constant 512 : index
    %7 = vector.load %arg2[%c0_9, %c512] : memref<128x1152xf32, #tpu.memory_space<vmem>>, vector<128x128xf32>
    %c0_10 = arith.constant 0 : index
    %c640 = arith.constant 640 : index
    %8 = vector.load %arg2[%c0_10, %c640] : memref<128x1152xf32, #tpu.memory_space<vmem>>, vector<128x128xf32>
    %c0_11 = arith.constant 0 : index
    %c768 = arith.constant 768 : index
    %9 = vector.load %arg2[%c0_11, %c768] : memref<128x1152xf32, #tpu.memory_space<vmem>>, vector<8x384xf32>
    %10 = vector.extract_strided_slice %9 {offsets = [0, 0], sizes = [1, 384], strides = [1, 1]} : vector<8x384xf32> to vector<1x384xf32>
    %11 = vector.extract_strided_slice %9 {offsets = [1, 0], sizes = [1, 128], strides = [1, 1]} : vector<8x384xf32> to vector<1x128xf32>
    %12 = vector.extract_strided_slice %9 {offsets = [1, 128], sizes = [1, 128], strides = [1, 1]} : vector<8x384xf32> to vector<1x128xf32>
    %13 = vector.extract_strided_slice %9 {offsets = [1, 256], sizes = [1, 128], strides = [1, 1]} : vector<8x384xf32> to vector<1x128xf32>
    %14 = vector.extract_strided_slice %9 {offsets = [2, 0], sizes = [4, 128], strides = [1, 1]} : vector<8x384xf32> to vector<4x128xf32>
    %cst = arith.constant dense<0.000000e+00> : vector<8x384xf32>
    %15 = tpu.matmul %4, %5, %cst {dimension_numbers = #tpu.dot_dimension_numbers<[1], [0], [0], [1], [0, 0, 1, 1], [], []>} : vector<8x128xf32>, vector<128x384xf32>, vector<8x384xf32> -> vector<8x384xf32>
    %16 = vector.broadcast %10 : vector<1x384xf32> to vector<8x384xf32>
    %17 = arith.addf %15, %16 : vector<8x384xf32>
    %18 = vector.extract_strided_slice %17 {offsets = [0, 0], sizes = [8, 128], strides = [1, 1]} : vector<8x384xf32> to vector<8x128xf32>
    %19 = vector.extract_strided_slice %17 {offsets = [0, 128], sizes = [8, 128], strides = [1, 1]} : vector<8x384xf32> to vector<8x128xf32>
    %20 = vector.extract_strided_slice %17 {offsets = [0, 256], sizes = [8, 128], strides = [1, 1]} : vector<8x384xf32> to vector<8x128xf32>
    %21 = arith.mulf %18, %19 : vector<8x128xf32>
    %cst_12 = arith.constant dense<0.000000e+00> : vector<8x128xf32>
    %22 = tpu.matmul %21, %7, %cst_12 {dimension_numbers = #tpu.dot_dimension_numbers<[1], [0], [0], [1], [0, 0, 1, 1], [], []>} : vector<8x128xf32>, vector<128x128xf32>, vector<8x128xf32> -> vector<8x128xf32>
    %23 = vector.extract_strided_slice %19 {offsets = [0, 96], sizes = [8, 32], strides = [1, 1]} : vector<8x128xf32> to vector<8x32xf32>
    %24 = vector.extract_strided_slice %19 {offsets = [0, 0], sizes = [8, 96], strides = [1, 1]} : vector<8x128xf32> to vector<8x96xf32>
    %25 = tpu.concatenate %23, %24 in 1 : vector<8x32xf32>, vector<8x96xf32> -> vector<8x128xf32>
    %26 = vector.extract_strided_slice %20 {offsets = [0, 96], sizes = [8, 32], strides = [1, 1]} : vector<8x128xf32> to vector<8x32xf32>
    %27 = vector.extract_strided_slice %20 {offsets = [0, 0], sizes = [8, 96], strides = [1, 1]} : vector<8x128xf32> to vector<8x96xf32>
    %28 = tpu.concatenate %26, %27 in 1 : vector<8x32xf32>, vector<8x96xf32> -> vector<8x128xf32>
    %29 = arith.mulf %18, %25 : vector<8x128xf32>
    %cst_13 = arith.constant dense<0.000000e+00> : vector<8x128xf32>
    %30 = tpu.matmul %29, %7, %cst_13 {dimension_numbers = #tpu.dot_dimension_numbers<[1], [0], [0], [1], [0, 0, 1, 1], [], []>} : vector<8x128xf32>, vector<128x128xf32>, vector<8x128xf32> -> vector<8x128xf32>
    %31 = vector.extract_strided_slice %19 {offsets = [0, 64], sizes = [8, 64], strides = [1, 1]} : vector<8x128xf32> to vector<8x64xf32>
    %32 = vector.extract_strided_slice %19 {offsets = [0, 0], sizes = [8, 64], strides = [1, 1]} : vector<8x128xf32> to vector<8x64xf32>
    %33 = tpu.concatenate %31, %32 in 1 : vector<8x64xf32>, vector<8x64xf32> -> vector<8x128xf32>
    %34 = vector.extract_strided_slice %20 {offsets = [0, 64], sizes = [8, 64], strides = [1, 1]} : vector<8x128xf32> to vector<8x64xf32>
    %35 = vector.extract_strided_slice %20 {offsets = [0, 0], sizes = [8, 64], strides = [1, 1]} : vector<8x128xf32> to vector<8x64xf32>
    %36 = tpu.concatenate %34, %35 in 1 : vector<8x64xf32>, vector<8x64xf32> -> vector<8x128xf32>
    %37 = arith.mulf %18, %33 : vector<8x128xf32>
    %cst_14 = arith.constant dense<0.000000e+00> : vector<8x128xf32>
    %38 = tpu.matmul %37, %7, %cst_14 {dimension_numbers = #tpu.dot_dimension_numbers<[1], [0], [0], [1], [0, 0, 1, 1], [], []>} : vector<8x128xf32>, vector<128x128xf32>, vector<8x128xf32> -> vector<8x128xf32>
    %39 = vector.extract_strided_slice %19 {offsets = [0, 32], sizes = [8, 96], strides = [1, 1]} : vector<8x128xf32> to vector<8x96xf32>
    %40 = vector.extract_strided_slice %19 {offsets = [0, 0], sizes = [8, 32], strides = [1, 1]} : vector<8x128xf32> to vector<8x32xf32>
    %41 = tpu.concatenate %39, %40 in 1 : vector<8x96xf32>, vector<8x32xf32> -> vector<8x128xf32>
    %42 = vector.extract_strided_slice %20 {offsets = [0, 32], sizes = [8, 96], strides = [1, 1]} : vector<8x128xf32> to vector<8x96xf32>
    %43 = vector.extract_strided_slice %20 {offsets = [0, 0], sizes = [8, 32], strides = [1, 1]} : vector<8x128xf32> to vector<8x32xf32>
    %44 = tpu.concatenate %42, %43 in 1 : vector<8x96xf32>, vector<8x32xf32> -> vector<8x128xf32>
    %45 = arith.mulf %18, %41 : vector<8x128xf32>
    %cst_15 = arith.constant dense<0.000000e+00> : vector<8x128xf32>
    %46 = tpu.matmul %45, %7, %cst_15 {dimension_numbers = #tpu.dot_dimension_numbers<[1], [0], [0], [1], [0, 0, 1, 1], [], []>} : vector<8x128xf32>, vector<128x128xf32>, vector<8x128xf32> -> vector<8x128xf32>
    %47 = arith.maximumf %22, %30 : vector<8x128xf32>
    %48 = arith.maximumf %47, %38 : vector<8x128xf32>
    %49 = arith.maximumf %48, %46 : vector<8x128xf32>
    %50 = arith.subf %22, %49 : vector<8x128xf32>
    %51 = math.exp %50 : vector<8x128xf32>
    %52 = arith.subf %30, %49 : vector<8x128xf32>
    %53 = math.exp %52 : vector<8x128xf32>
    %54 = arith.subf %38, %49 : vector<8x128xf32>
    %55 = math.exp %54 : vector<8x128xf32>
    %56 = arith.subf %46, %49 : vector<8x128xf32>
    %57 = math.exp %56 : vector<8x128xf32>
    %58 = arith.addf %51, %53 : vector<8x128xf32>
    %59 = arith.addf %58, %55 : vector<8x128xf32>
    %60 = arith.addf %59, %57 : vector<8x128xf32>
    %61 = vector.extract_strided_slice %14 {offsets = [0, 0], sizes = [1, 128], strides = [1, 1]} : vector<4x128xf32> to vector<1x128xf32>
    %62 = vector.broadcast %61 : vector<1x128xf32> to vector<8x128xf32>
    %63 = arith.mulf %51, %62 : vector<8x128xf32>
    %64 = arith.mulf %63, %20 : vector<8x128xf32>
    %65 = vector.extract_strided_slice %14 {offsets = [1, 0], sizes = [1, 128], strides = [1, 1]} : vector<4x128xf32> to vector<1x128xf32>
    %66 = vector.broadcast %65 : vector<1x128xf32> to vector<8x128xf32>
    %67 = arith.mulf %53, %66 : vector<8x128xf32>
    %68 = arith.mulf %67, %28 : vector<8x128xf32>
    %69 = arith.addf %64, %68 : vector<8x128xf32>
    %70 = vector.extract_strided_slice %14 {offsets = [2, 0], sizes = [1, 128], strides = [1, 1]} : vector<4x128xf32> to vector<1x128xf32>
    %71 = vector.broadcast %70 : vector<1x128xf32> to vector<8x128xf32>
    %72 = arith.mulf %55, %71 : vector<8x128xf32>
    %73 = arith.mulf %72, %36 : vector<8x128xf32>
    %74 = arith.addf %69, %73 : vector<8x128xf32>
    %75 = vector.extract_strided_slice %14 {offsets = [3, 0], sizes = [1, 128], strides = [1, 1]} : vector<4x128xf32> to vector<1x128xf32>
    %76 = vector.broadcast %75 : vector<1x128xf32> to vector<8x128xf32>
    %77 = arith.mulf %57, %76 : vector<8x128xf32>
    %78 = arith.mulf %77, %44 : vector<8x128xf32>
    %79 = arith.addf %74, %78 : vector<8x128xf32>
    %80 = arith.divf %79, %60 : vector<8x128xf32>
    %cst_16 = arith.constant dense<0.000000e+00> : vector<8x128xf32>
    %81 = tpu.matmul %80, %6, %cst_16 {dimension_numbers = #tpu.dot_dimension_numbers<[1], [0], [0], [1], [0, 0, 1, 1], [], []>} : vector<8x128xf32>, vector<128x128xf32>, vector<8x128xf32> -> vector<8x128xf32>
    %82 = vector.broadcast %11 : vector<1x128xf32> to vector<8x128xf32>
    %83 = arith.addf %81, %82 : vector<8x128xf32>
    %84 = arith.addf %1, %83 : vector<8x128xf32>
    %cst_17 = arith.constant dense<0.000000e+00> : vector<8x128xf32>
    %85 = tpu.matmul %84, %8, %cst_17 {dimension_numbers = #tpu.dot_dimension_numbers<[1], [0], [0], [1], [0, 0, 1, 1], [], []>} : vector<8x128xf32>, vector<128x128xf32>, vector<8x128xf32> -> vector<8x128xf32>
    %86 = arith.subf %84, %85 : vector<8x128xf32>
    %87 = arith.mulf %86, %86 : vector<8x128xf32>
    %cst_18 = arith.constant dense<0.000000e+00> : vector<8x128xf32>
    %88 = tpu.matmul %87, %8, %cst_18 {dimension_numbers = #tpu.dot_dimension_numbers<[1], [0], [0], [1], [0, 0, 1, 1], [], []>} : vector<8x128xf32>, vector<128x128xf32>, vector<8x128xf32> -> vector<8x128xf32>
    %cst_19 = arith.constant 9.99999974E-6 : f32
    %89 = vector.broadcast %cst_19 : f32 to vector<8x128xf32>
    %90 = arith.addf %88, %89 : vector<8x128xf32>
    %91 = math.rsqrt %90 : vector<8x128xf32>
    %92 = arith.mulf %86, %91 : vector<8x128xf32>
    %93 = vector.broadcast %12 : vector<1x128xf32> to vector<8x128xf32>
    %94 = arith.mulf %92, %93 : vector<8x128xf32>
    %95 = vector.broadcast %13 : vector<1x128xf32> to vector<8x128xf32>
    %96 = arith.addf %94, %95 : vector<8x128xf32>
    %c0_20 = arith.constant 0 : index
    %c0_21 = arith.constant 0 : index
    %c0_22 = arith.constant 0 : index
    %97 = vector.load %arg3[%c0_20, %c0_21, %c0_22] : memref<1x8x128xf32, #tpu.memory_space<vmem>>, vector<1x8x128xf32>
    %98 = vector.shape_cast %97 : vector<1x8x128xf32> to vector<8x128xf32>
    %99 = vector.shape_cast %96 : vector<8x128xf32> to vector<1x8x128xf32>
    tpu.vector_store %arg3[%c0_20, %c0_21, %c0_22], %99 {strides = array<i32>} : memref<1x8x128xf32, #tpu.memory_space<vmem>>, vector<1x8x128xf32>,
    return
  }
  func.func @transform_0(%arg0: i32) -> (i32, i32, i32, i32) {
    %c0_i32 = arith.constant 0 : i32
    %c0_i32_0 = arith.constant 0 : i32
    %c0_i32_1 = arith.constant 0 : i32
    %c0_i32_2 = arith.constant 0 : i32
    return %arg0, %c0_i32, %c0_i32_0, %c0_i32_1 : i32, i32, i32, i32
  }
  func.func @transform_1(%arg0: i32) -> (i32, i32) {
    %c0_i32 = arith.constant 0 : i32
    %c0_i32_0 = arith.constant 0 : i32
    %c0_i32_1 = arith.constant 0 : i32
    return %c0_i32, %c0_i32_0 : i32, i32
  }
  func.func @transform_2(%arg0: i32) -> (i32, i32, i32) {
    %c0_i32 = arith.constant 0 : i32
    %c0_i32_0 = arith.constant 0 : i32
    %c0_i32_1 = arith.constant 0 : i32
    return %arg0, %c0_i32, %c0_i32_0 : i32, i32, i32
  }
}

</mosaic_0001>

<bundles_post_ra>
// kernel: tpu_custom_call.1
= control target key start
LH: loop header
LB: loop body
LE: loop exit
PB: predicated region body
PF: predicated region fallthrough
CT: control target
= control target key end

     0   :  { %7 = vsyncpa [#allocation3], 0  ;;  %s1899_s0 = inlined_call_operand.hbm [shape: f32[1,2,8,128], index: 0, kind: input, shape index: {}]   ;;  %s1900_s1 = inlined_call_operand.hbm [shape: f32[128,1152], index: 1, kind: input, shape index: {}]   ;;  %s1901_s2 = inlined_call_operand.hbm [shape: f32[1,8,128], index: 2, kind: output, shape index: {}]  }
   0x1   :  { %8 = vsyncpa [#allocation6], 0 }
   0x2   :  { %9 = vsyncpa [#allocation4], 0  ;;  %s1630_s9 = smov [#allocation2]   ;;  %s1558_s13 = scalar_lea.hbm %s1899_s0, 256 }
   0x3   :  { %s15_s10 = sshll.u32 %s1630_s9, 4  ;;  %p1559_p0 = scmp.ne.s32.totalorder %s1899_s0, %s1558_s13  ;;  %s16_s10 = int_to_ptr.vmem [resolvable:$true] %s15_s10 }
   0x4   :  { %p1562_p1 = scmp.lt.u32.totalorder %s1558_s13, %s1899_s0 }
   0x6   :  { %p1564_p2 = pnand %p1562_p1, %p1559_p0 }
   0x8   :  { %1567 = shalt.err (!%p1564_p2)
}
   0x9   :  { %s1568_s18 = scalar_lea.vmem %s16_s10, 256  ;;  %p1573_p4 = scmp.lt.s32.totalorder %s16_s10, %s16_s10 }
   0xa   :  { %p1569_p3 = scmp.ne.s32.totalorder %s16_s10, %s1568_s18  ;;  %p1574_p5 = scmp.lt.s32.totalorder %s1568_s18, %s1568_s18 }
   0xc   :  { %p1575_p6 = por %p1574_p5, %p1573_p4 }
   0xe   :  { %p1576_p7 = pnand %p1575_p6, %p1569_p3 }
  0x10   :  { %1579 = shalt.err (!%p1576_p7)
}
  0x11   :  { %s1631_s19 = smov 128   ;;  %s1632_s20 = smov 8  }
  0x12   :  { %21 = dma.hbm_to_vmem [thread:$0]  %s1899_s0, 256, %s16_s10, [#allocation3], %s1631_s19, %s1631_s19, %s1632_s20  }
  0x13   :  { %s1633_s23 = smov [#allocation5]   ;;  %s1580_s27 = scalar_lea.hbm %s1900_s1, 18432 }
  0x14   :  { %s27_s24 = sshll.u32 %s1633_s23, 4  ;;  %p1581_p8 = scmp.ne.s32.totalorder %s1900_s1, %s1580_s27  ;;  %s28_s24 = int_to_ptr.vmem [resolvable:$true] %s27_s24 }
  0x15   :  { %p1584_p9 = scmp.lt.u32.totalorder %s1580_s27, %s1900_s1 }
  0x17   :  { %p1586_p10 = pnand %p1584_p9, %p1581_p8 }
  0x19   :  { %1589 = shalt.err (!%p1586_p10)
}
  0x1a   :  { %s1590_s4 = scalar_lea.vmem %s28_s24, 18432  ;;  %p1595_p12 = scmp.lt.s32.totalorder %s28_s24, %s28_s24 }
  0x1b   :  { %p1591_p11 = scmp.ne.s32.totalorder %s28_s24, %s1590_s4  ;;  %p1596_p13 = scmp.lt.s32.totalorder %s1590_s4, %s1590_s4 }
  0x1d   :  { %p1597_p0 = por %p1596_p13, %p1595_p12 }
  0x1f   :  { %p1598_p1 = pnand %p1597_p0, %p1591_p11 }
  0x21   :  { %1601 = shalt.err (!%p1598_p1)
}
  0x22   :  { %s1634_s0 = smov 1152   ;;  %s1635_s5 = smov 72  }
  0x23   :  { %33 = dma.hbm_to_vmem [thread:$0]  %s1900_s1, 18432, %s28_s24, [#allocation6], %s1634_s0, %s1634_s0, %s1635_s5  }
  0x24   :  { %1624 = dma.done.wait [#allocation3], 256  }
  0x25   :  { %1625 = vsyncadd [#allocation3], 4294967040 }
  0x26   :  { %1626 = dma.done.wait [#allocation6], 18432  }
  0x27   :  { %1627 = vsyncadd [#allocation6], 4294948864  ;;  %v1636_v0 = vmov 0.0   ;;  %v1637_v1 = vmov 0.0|0.0   ;;  %v45_v2 = vld [vmem:[#allocation5 + $0x8] sm:$0xff]  ;;  %v48_v3 = vld [vmem:[#allocation5 + $0x50] sm:$0xff] }
  0x28   :  { %219 = vmatprep.mubr.f32.mxu0 %v1636_v0  ;;  %1341 = vmatprep.subr.bf16.mxu1 %v1637_v1  ;;  %v44_v4 = vld [vmem:[#allocation5] sm:$0xff]  ;;  %v1309_v5 = vpack.c.bf16 %v48_v3, %v45_v2  ;;  %v47_v6 = vld [vmem:[#allocation5 + $0x48] sm:$0xff]  ;;  %v51_v7 = vld [vmem:[#allocation5 + $0x98] sm:$0xff]  ;;  %vm1638_vm0 = vmmov 0   ;;  %s1639_s1 = smov 96   ;;  %s1640_s8 = smov 32  }
  0x29   :  { %v54_v8 = vld [vmem:[#allocation5 + $0xe0] sm:$0xff]  ;;  %v1311_v9 = vpack.c.bf16 %v47_v6, %v44_v4  ;;  %v50_v11 = vld [vmem:[#allocation5 + $0x90] sm:$0xff]  ;;  %v53_v12 = vld [vmem:[#allocation5 + $0xd8] sm:$0xff]  ;;  %1061 = vmatprep.mubr.msk.f32.mxu1 %vm1638_vm0, %v1636_v0  ;;  %s1641_s9 = smov 64   ;;  %s1642_s10 = smov [#allocation7]  }
  0x2a   :  { %v1313_v10 = vpack.c.bf16 %v54_v8, %v51_v7  ;;  %v57_v13 = vld [vmem:[#allocation5 + $0x128] sm:$0xff]  ;;  %1310 = vmatprep.subr.bf16.mxu0 %v1309_v5  ;;  %v60_v14 = vld [vmem:[#allocation5 + $0x170] sm:$0xff]  ;;  %v1315_v15 = vpack.c.bf16 %v53_v12, %v50_v11  ;;  %v56_v17 = vld [vmem:[#allocation5 + $0x120] sm:$0xff]  ;;  %s883_s11 = sshll.u32 %s1642_s10, 4  ;;  %s884_s11 = int_to_ptr.vmem [resolvable:$true] %s883_s11 }
  0x2b   :  { %1312 = vmatpush1.bf16.msra.mxu0 %v1311_v9  ;;  %v1317_v16 = vpack.c.bf16 %v60_v14, %v57_v13  ;;  %v59_v18 = vld [vmem:[#allocation5 + $0x168] sm:$0xff]  ;;  %v63_v19 = vld [vmem:[#allocation5 + $0x1b8] sm:$0xff]  ;;  %v66_v20 = vld [vmem:[#allocation5 + $0x200] sm:$0xff]  ;;  %s1602_s12 = scalar_lea.vmem %s884_s11, 128  ;;  %p1607_p3 = scmp.lt.s32.totalorder %s884_s11, %s884_s11 }
  0x2c   :  { %1314 = vmatprep.subr.bf16.mxu0 %v1313_v10  ;;  %v1319_v21 = vpack.c.bf16 %v59_v18, %v56_v17  ;;  %v1321_v22 = vpack.c.bf16 %v66_v20, %v63_v19  ;;  %v62_v23 = vld [vmem:[#allocation5 + $0x1b0] sm:$0xff]  ;;  %v65_v24 = vld [vmem:[#allocation5 + $0x1f8] sm:$0xff]  ;;  %v69_v25 = vld [vmem:[#allocation5 + $0x248] sm:$0xff]  ;;  %p1603_p2 = scmp.ne.s32.totalorder %s884_s11, %s1602_s12  ;;  %p1608_p4 = scmp.lt.s32.totalorder %s1602_s12, %s1602_s12 }
  0x2d   :  { %v72_v26 = vld [vmem:[#allocation5 + $0x290] sm:$0xff]  ;;  %v1323_v27 = vpack.c.bf16 %v65_v24, %v62_v23  ;;  %v68_v29 = vld [vmem:[#allocation5 + $0x240] sm:$0xff]  ;;  %v71_v30 = vld [vmem:[#allocation5 + $0x288] sm:$0xff] }
  0x2e   :  { %v1325_v28 = vpack.c.bf16 %v72_v26, %v69_v25  ;;  %v75_v31 = vld [vmem:[#allocation5 + $0x2d8] sm:$0xff]  ;;  %v78_v32 = vld [vmem:[#allocation5 + $0x320] sm:$0xff]  ;;  %v1327_v33 = vpack.c.bf16 %v71_v30, %v68_v29  ;;  %v74_v35 = vld [vmem:[#allocation5 + $0x2d0] sm:$0xff]  ;;  %p1609_p5 = por %p1608_p4, %p1607_p3 }
  0x2f   :  { %1316 = vmatpush1.bf16.msra.mxu0 %v1315_v15  ;;  %v1329_v34 = vpack.c.bf16 %v78_v32, %v75_v31  ;;  %v77_v36 = vld [vmem:[#allocation5 + $0x318] sm:$0xff]  ;;  %v81_v37 = vld [vmem:[#allocation5 + $0x368] sm:$0xff]  ;;  %v84_v38 = vld [vmem:[#allocation5 + $0x3b0] sm:$0xff] }
  0x30   :  { %1318 = vmatprep.subr.bf16.mxu0 %v1317_v16  ;;  %v1331_v39 = vpack.c.bf16 %v77_v36, %v74_v35  ;;  %v1333_v40 = vpack.c.bf16 %v84_v38, %v81_v37  ;;  %v80_v41 = vld [vmem:[#allocation5 + $0x360] sm:$0xff]  ;;  %v83_v42 = vld [vmem:[#allocation5 + $0x3a8] sm:$0xff]  ;;  %v87_v43 = vld [vmem:[#allocation5 + $0x3f8] sm:$0xff]  ;;  %p1610_p6 = pnand %p1609_p5, %p1603_p2 }
  0x31   :  { %v90_v44 = vld [vmem:[#allocation5 + $0x440] sm:$0xff]  ;;  %v1335_v45 = vpack.c.bf16 %v83_v42, %v80_v41  ;;  %v86_v47 = vld [vmem:[#allocation5 + $0x3f0] sm:$0xff]  ;;  %v89_v48 = vld [vmem:[#allocation5 + $0x438] sm:$0xff] }
  0x32   :  { %v1337_v46 = vpack.c.bf16 %v90_v44, %v87_v43  ;;  %v1339_v49 = vpack.c.bf16 %v89_v48, %v86_v47  ;;  %v1684_v50 = vld [vmem:[#allocation2] sm:$0xff]  ;;  %v42_v51 = vld [vmem:[#allocation2 + $0x8] sm:$0xff]  ;;  %v108_v52 = vld [vmem:[#allocation5 + $0x20] sm:$0xff] }
  0x33   :  { %1320 = vmatpush1.bf16.msra.mxu0 %v1319_v21  ;;  %v109_v53 = vld [vmem:[#allocation5 + $0x68] sm:$0xff]  ;;  %v1687_v54 = vadd.f32 %v42_v51, %v1684_v50  ;;  %v110_v56 = vld [vmem:[#allocation5 + $0xb0] sm:$0xff]  ;;  %v111_v57 = vld [vmem:[#allocation5 + $0xf8] sm:$0xff] }
  0x34   :  { %1322 = vmatprep.subr.bf16.mxu0 %v1321_v22  ;;  %v1689_v55 = vpack.c.bf16 %v109_v53, %v108_v52  ;;  %v1694_v58 = vpack.c.bf16 %v111_v57, %v110_v56  ;;  %v112_v59 = vld [vmem:[#allocation5 + $0x140] sm:$0xff]  ;;  %v113_v60 = vld [vmem:[#allocation5 + $0x188] sm:$0xff]  ;;  %v114_v62 = vld [vmem:[#allocation5 + $0x1d0] sm:$0xff] }
  0x35   :  { %v1698_v61 = vpack.c.bf16 %v113_v60, %v112_v59  ;;  %v115_v63 = vld [vmem:[#allocation5 + $0x218] sm:$0xff]  ;;  %v116_v3 = vld [vmem:[#allocation5 + $0x260] sm:$0xff]  ;;  %v117_v4 = vld [vmem:[#allocation5 + $0x2a8] sm:$0xff] }
  0x36   :  { %v1702_v2 = vpack.c.bf16 %v115_v63, %v114_v62  ;;  %v1706_v5 = vpack.c.bf16 %v117_v4, %v116_v3  ;;  %v118_v6 = vld [vmem:[#allocation5 + $0x2f0] sm:$0xff]  ;;  %v119_v7 = vld [vmem:[#allocation5 + $0x338] sm:$0xff]  ;;  %v120_v9 = vld [vmem:[#allocation5 + $0x380] sm:$0xff] }
  0x37   :  { %1324 = vmatpush1.bf16.msra.mxu0 %v1323_v27  ;;  %v1710_v8 = vpack.c.bf16 %v119_v7, %v118_v6  ;;  %v121_v10 = vld [vmem:[#allocation5 + $0x3c8] sm:$0xff]  ;;  %v122_v12 = vld [vmem:[#allocation5 + $0x410] sm:$0xff]  ;;  %v123_v13 = vld [vmem:[#allocation5 + $0x458] sm:$0xff] }
  0x38   :  { %1326 = vmatprep.subr.bf16.mxu0 %v1325_v28  ;;  %v1714_v11 = vpack.c.bf16 %v121_v10, %v120_v9  ;;  %v1719_v14 = vpack.c.bf16 %v123_v13, %v122_v12  ;;  %v46_v15 = vld [vmem:[#allocation5 + $0x10] sm:$0xff]  ;;  %v49_v16 = vld [vmem:[#allocation5 + $0x58] sm:$0xff]  ;;  %v52_v17 = vld [vmem:[#allocation5 + $0xa0] sm:$0xff] }
  0x39   :  { %v1342_v18 = vpack.c.bf16 %v49_v16, %v46_v15  ;;  %v55_v19 = vld [vmem:[#allocation5 + $0xe8] sm:$0xff]  ;;  %v58_v21 = vld [vmem:[#allocation5 + $0x130] sm:$0xff]  ;;  %v61_v22 = vld [vmem:[#allocation5 + $0x178] sm:$0xff] }
  0x3a   :  { %v1345_v20 = vpack.c.bf16 %v55_v19, %v52_v17  ;;  %v1348_v23 = vpack.c.bf16 %v61_v22, %v58_v21  ;;  %v64_v24 = vld [vmem:[#allocation5 + $0x1c0] sm:$0xff]  ;;  %v67_v25 = vld [vmem:[#allocation5 + $0x208] sm:$0xff]  ;;  %v70_v27 = vld [vmem:[#allocation5 + $0x250] sm:$0xff] }
  0x3b   :  { %1328 = vmatpush1.bf16.msra.mxu0 %v1327_v33  ;;  %1343 = vmatpush3.bf16.msra.mxu1 %v1342_v18  ;;  %v1351_v26 = vpack.c.bf16 %v67_v25, %v64_v24  ;;  %v73_v28 = vld [vmem:[#allocation5 + $0x298] sm:$0xff]  ;;  %v76_v30 = vld [vmem:[#allocation5 + $0x2e0] sm:$0xff]  ;;  %v79_v31 = vld [vmem:[#allocation5 + $0x328] sm:$0xff] }
  0x3c   :  { %1330 = vmatprep.subr.bf16.mxu0 %v1329_v34  ;;  %1344 = vmatprep.subr.bf16.mxu1 %v1637_v1  ;;  %v1354_v29 = vpack.c.bf16 %v73_v28, %v70_v27  ;;  %v1357_v32 = vpack.c.bf16 %v79_v31, %v76_v30  ;;  %v82_v33 = vld [vmem:[#allocation5 + $0x370] sm:$0xff]  ;;  %v85_v34 = vld [vmem:[#allocation5 + $0x3b8] sm:$0xff]  ;;  %v88_v36 = vld [vmem:[#allocation5 + $0x400] sm:$0xff] }
  0x3d   :  { %v1360_v35 = vpack.c.bf16 %v85_v34, %v82_v33  ;;  %v91_v37 = vld [vmem:[#allocation5 + $0x448] sm:$0xff]  ;;  %v1757_v42 = vld [vmem:[#allocation5 + $0x30] sm:$0xff]  ;;  %v1759_v43 = vld [vmem:[#allocation5 + $0x38] sm:$0xff] }
  0x3e   :  { %v1363_v38 = vpack.c.bf16 %v91_v37, %v88_v36  ;;  %v92_v3 = vld [vmem:[#allocation5 + $0x18] sm:$0xff]  ;;  %v93_v4 = vld [vmem:[#allocation5 + $0x60] sm:$0xff]  ;;  %v94_v6 = vld [vmem:[#allocation5 + $0xa8] sm:$0xff] }
  0x3f   :  { %1332 = vmatpush1.bf16.msra.mxu0 %v1331_v39  ;;  %1346 = vmatpush3.bf16.msra.mxu1 %v1345_v20  ;;  %v143_v39 = vlaneseq  ;;  %v95_v7 = vld [vmem:[#allocation5 + $0xf0] sm:$0xff]  ;;  %v96_v9 = vld [vmem:[#allocation5 + $0x138] sm:$0xff]  ;;  %v97_v10 = vld [vmem:[#allocation5 + $0x180] sm:$0xff] }
  0x40   :  { %1334 = vmatprep.subr.bf16.mxu0 %v1333_v40  ;;  %1347 = vmatprep.subr.bf16.mxu1 %v1637_v1  ;;  %v98_v12 = vld [vmem:[#allocation5 + $0x1c8] sm:$0xff]  ;;  %v99_v13 = vld [vmem:[#allocation5 + $0x210] sm:$0xff]  ;;  %v100_v15 = vld [vmem:[#allocation5 + $0x258] sm:$0xff] }
  0x41   :  { %v1754_v40 = vshrl.u32 %v143_v39, 7  ;;  %v101_v16 = vld [vmem:[#allocation5 + $0x2a0] sm:$0xff]  ;;  %v102_v18 = vld [vmem:[#allocation5 + $0x2e8] sm:$0xff]  ;;  %v103_v19 = vld [vmem:[#allocation5 + $0x330] sm:$0xff] }
  0x42   :  { %v1474_v17 = vpack.c.bf16 %v101_v16, %v100_v15  ;;  %v1477_v20 = vpack.c.bf16 %v103_v19, %v102_v18  ;;  %v104_v21 = vld [vmem:[#allocation5 + $0x378] sm:$0xff]  ;;  %v105_v22 = vld [vmem:[#allocation5 + $0x3c0] sm:$0xff]  ;;  %v106_v24 = vld [vmem:[#allocation5 + $0x408] sm:$0xff] }
  0x43   :  { %1336 = vmatpush1.bf16.msra.mxu0 %v1335_v45  ;;  %1349 = vmatpush3.bf16.msra.mxu1 %v1348_v23  ;;  %v145_v41 = vsub.s32 0, %v1754_v40  ;;  %v1480_v23 = vpack.c.bf16 %v105_v22, %v104_v21  ;;  %v107_v25 = vld [vmem:[#allocation5 + $0x450] sm:$0xff]  ;;  %v124_v27 = vld [vmem:[#allocation5 + $0x28] sm:$0xff]  ;;  %v127_v31 = vld [vmem:[#allocation5 + $0x100] sm:$0xff] }
  0x44   :  { %1338 = vmatprep.subr.bf16.mxu0 %v1337_v46  ;;  %1350 = vmatprep.subr.bf16.mxu1 %v1637_v1  ;;  %v125_v28 = vld [vmem:[#allocation5 + $0x70] sm:$0xff]  ;;  %v128_v33 = vld [vmem:[#allocation5 + $0x148] sm:$0xff]  ;;  %v130_v36 = vld [vmem:[#allocation5 + $0x1d8] sm:$0xff] }
  0x45   :  { %v146_v44 = vrot.slane %v1757_v42, %v145_v41  ;;  %v150_v45 = vrot.slane %v1759_v43, %v145_v41  ;;  %v1827_v30 = vpack.c.bf16 %v125_v28, %v124_v27  ;;  %v129_v34 = vld [vmem:[#allocation5 + $0x190] sm:$0xff]  ;;  %v131_v37 = vld [vmem:[#allocation5 + $0x220] sm:$0xff]  ;;  %v132_v39 = vld [vmem:[#allocation5 + $0x268] sm:$0xff] }
  0x47   :  { %1340 = vmatpush1.bf16.msra.mxu0 %v1339_v49  ;;  %1352 = vmatpush3.bf16.msra.mxu1 %v1351_v26  ;;  %v1483_v26 = vpack.c.bf16 %v107_v25, %v106_v24 }
  0x48   :  { %1365 = vmatprep.subr.bf16.mxu0 %v1637_v1  ;;  %1353 = vmatprep.subr.bf16.mxu1 %v1637_v1 }
  0x4a   :  { %220 = vmatmul.mubr.f32.vlgmr.msra.gmra.mrb[0].mxu0 %v1687_v54 }
  0x4b   :  { %1367 = vmatpush3.bf16.msra.mxu0 %v1689_v55  ;;  %1096 = vmatprep.mubr.msk.f32.mxu0 %vm1638_vm0, %v1636_v0 }
  0x4c   :  { %1368 = vmatprep.subr.bf16.mxu0 %v1637_v1  ;;  %1355 = vmatpush3.bf16.msra.mxu1 %v1354_v29  ;;  %v126_v29 = vld [vmem:[#allocation5 + $0xb8] sm:$0xff] }
  0x4d   :  { %1356 = vmatprep.subr.bf16.mxu1 %v1637_v1 }
  0x4f   :  { %1370 = vmatpush3.bf16.msra.mxu0 %v1694_v58 }
  0x50   :  { %1371 = vmatprep.subr.bf16.mxu0 %v1637_v1  ;;  %1358 = vmatpush3.bf16.msra.mxu1 %v1357_v32  ;;  %v1830_v32 = vpack.c.bf16 %v127_v31, %v126_v29 }
  0x51   :  { %1359 = vmatprep.subr.bf16.mxu1 %v1637_v1 }
  0x53   :  { %1373 = vmatpush3.bf16.msra.mxu0 %v1698_v61 }
  0x54   :  { %1374 = vmatprep.subr.bf16.mxu0 %v1637_v1  ;;  %1361 = vmatpush3.bf16.msra.mxu1 %v1360_v35  ;;  %v1834_v35 = vpack.c.bf16 %v129_v34, %v128_v33 }
  0x55   :  { %1362 = vmatprep.subr.bf16.mxu1 %v1637_v1 }
  0x57   :  { %1376 = vmatpush3.bf16.msra.mxu0 %v1702_v2 }
  0x58   :  { %1377 = vmatprep.subr.bf16.mxu0 %v1637_v1  ;;  %1364 = vmatpush3.bf16.msra.mxu1 %v1363_v38  ;;  %v1838_v38 = vpack.c.bf16 %v131_v37, %v130_v36 }
  0x59   :  { %1389 = vmatprep.subr.bf16.mxu1 %v1637_v1 }
  0x5b   :  { %1379 = vmatpush3.bf16.msra.mxu0 %v1706_v5  ;;  %1062 = vmatmul.mubr.f32.vlgmr.msra.gmra.mrb[0].mxu1 %v1687_v54  ;;  %v1784_v54 = vld [vmem:[#allocation5 + $0x40] sm:$0xff] }
  0x5c   :  { %1380 = vmatprep.subr.bf16.mxu0 %v1637_v1  ;;  %1391 = vmatpush3.bf16.msra.mxu1 %v1689_v55  ;;  %v154_v57 = vrot.slane %v1784_v54, %v145_v41  ;;  %v133_v41 = vld [vmem:[#allocation5 + $0x2b0] sm:$0xff] }
  0x5d   :  { %1131 = vmatprep.mubr.msk.f32.mxu1 %vm1638_vm0, %v1636_v0  ;;  %1392 = vmatprep.subr.bf16.mxu1 %v1637_v1 }
  0x5f   :  { %1382 = vmatpush3.bf16.msra.mxu0 %v1710_v8 }
  0x60   :  { %1383 = vmatprep.subr.bf16.mxu0 %v1637_v1  ;;  %1394 = vmatpush3.bf16.msra.mxu1 %v1694_v58 }
  0x61   :  { %1395 = vmatprep.subr.bf16.mxu1 %v1637_v1 }
  0x63   :  { %1385 = vmatpush3.bf16.msra.mxu0 %v1714_v11 }
  0x64   :  { %1386 = vmatprep.subr.bf16.mxu0 %v1637_v1  ;;  %1397 = vmatpush3.bf16.msra.mxu1 %v1698_v61 }
  0x65   :  { %1398 = vmatprep.subr.bf16.mxu1 %v1637_v1 }
  0x67   :  { %1388 = vmatpush3.bf16.msra.mxu0 %v1719_v14 }
  0x68   :  { %1413 = vmatprep.subr.bf16.mxu0 %v1637_v1  ;;  %1400 = vmatpush3.bf16.msra.mxu1 %v1702_v2 }
  0x69   :  { %1401 = vmatprep.subr.bf16.mxu1 %v1637_v1 }
  0x6c   :  { %1403 = vmatpush3.bf16.msra.mxu1 %v1706_v5 }
  0x6d   :  { %1404 = vmatprep.subr.bf16.mxu1 %v1637_v1 }
  0x70   :  { %1406 = vmatpush3.bf16.msra.mxu1 %v1710_v8 }
  0x71   :  { %1407 = vmatprep.subr.bf16.mxu1 %v1637_v1 }
  0x74   :  { %1409 = vmatpush3.bf16.msra.mxu1 %v1714_v11 }
  0x75   :  { %1410 = vmatprep.subr.bf16.mxu1 %v1637_v1 }
  0x78   :  { %1412 = vmatpush3.bf16.msra.mxu1 %v1719_v14 }
  0x79   :  { %1437 = vmatprep.subr.bf16.mxu1 %v1637_v1 }
 0x11d   :  { %v221_v46 = vpop.f32.mrb[0].mxu0 }
 0x11e   :  { %v222_v47 = vadd.f32 %v221_v46, %v146_v44  ;;  %v223_v48 = vpop.f32.mrb[1].mxu0  ;;  %v1842_v44 = vpack.c.bf16 %v133_v41, %v132_v39  ;;  %v135_v46 = vld [vmem:[#allocation5 + $0x340] sm:$0xff] }
 0x11f   :  { %v224_v49 = vadd.f32 %v223_v48, %v150_v45  ;;  %v134_v45 = vld [vmem:[#allocation5 + $0x2f8] sm:$0xff]  ;;  %v136_v48 = vld [vmem:[#allocation5 + $0x388] sm:$0xff] }
 0x121   :  { %523 = vrot.lane.b32.xlu1 %v224_v49, %s1639_s1  ;;  %368 = vrot.lane.b32.xlu0 %v224_v49, %s1640_s8  ;;  %v296_v51 = vmul.f32 %v224_v49, %v222_v47 }
 0x123   :  { %1097 = vmatmul.mubr.f32.vlgmr.msra.gmra.mrb[2].mxu0 %v296_v51 }
 0x124   :  { %1415 = vmatpush3.bf16.msra.mxu0 %v1689_v55  ;;  %1166 = vmatprep.mubr.msk.f32.mxu0 %vm1638_vm0, %v1636_v0 }
 0x125   :  { %446 = vrot.lane.b32.xlu0 %v224_v49, %s1641_s9  ;;  %1416 = vmatprep.subr.bf16.mxu0 %v1637_v1  ;;  %v137_v49 = vld [vmem:[#allocation5 + $0x3d0] sm:$0xff] }
 0x126   :  { %v1850_v51 = vpack.c.bf16 %v137_v49, %v136_v48 }
 0x128   :  { %1418 = vmatpush3.bf16.msra.mxu0 %v1694_v58 }
 0x129   :  { %1419 = vmatprep.subr.bf16.mxu0 %v1637_v1 }
 0x12c   :  { %1421 = vmatpush3.bf16.msra.mxu0 %v1698_v61 }
 0x12d   :  { %1422 = vmatprep.subr.bf16.mxu0 %v1637_v1 }
 0x12e   :  { %v292_v60 = vpop.f32.mrb[0].mxu1 }
 0x12f   :  { %v1792_v62 = vadd.f32 %v292_v60, %v154_v57  ;;  %v1063_v63 = vpop.f32.mrb[1].mxu1 }
 0x130   :  { %1424 = vmatpush3.bf16.msra.mxu0 %v1702_v2 }
 0x131   :  { %1425 = vmatprep.subr.bf16.mxu0 %v1637_v1  ;;  %372 = vrot.lane.b32.xlu1 %v1792_v62, %s1640_s8 }
 0x132   :  { %449 = vrot.lane.b32.xlu0 %v1792_v62, %s1641_s9 }
 0x134   :  { %1427 = vmatpush3.bf16.msra.mxu0 %v1706_v5 }
 0x135   :  { %1428 = vmatprep.subr.bf16.mxu0 %v1637_v1  ;;  %526 = vrot.lane.b32.xlu1 %v1792_v62, %s1639_s1 }
 0x138   :  { %1430 = vmatpush3.bf16.msra.mxu0 %v1710_v8 }
 0x139   :  { %1431 = vmatprep.subr.bf16.mxu0 %v1637_v1 }
 0x13c   :  { %1433 = vmatpush3.bf16.msra.mxu0 %v1714_v11 }
 0x13d   :  { %1434 = vmatprep.subr.bf16.mxu0 %v1637_v1 }
 0x140   :  { %1436 = vmatpush3.bf16.msra.mxu0 %v1719_v14 }
 0x141   :  { %1461 = vmatprep.subr.bf16.mxu0 %v1637_v1 }
 0x193   :  { %v369_v52 = vpop.permute.xlu0 %368 }
 0x194   :  { %v375_v53 = vmul.f32 %v369_v52, %v222_v47 }
 0x196   :  { %1132 = vmatmul.mubr.f32.vlgmr.msra.gmra.mrb[2].mxu1 %v375_v53 }
 0x197   :  { %1439 = vmatpush3.bf16.msra.mxu1 %v1689_v55  ;;  %v447_v56 = vpop.permute.xlu0 %446  ;;  %1201 = vmatprep.mubr.msk.f32.mxu1 %vm1638_vm0, %v1636_v0  ;;  %v524_v55 = vpop.permute.xlu1 %523 }
 0x198   :  { %v452_v59 = vmul.f32 %v447_v56, %v222_v47  ;;  %1440 = vmatprep.subr.bf16.mxu1 %v1637_v1 }
 0x19a   :  { %1167 = vmatmul.mubr.f32.vlgmr.msra.gmra.mrb[4].mxu0 %v452_v59 }
 0x19b   :  { %1442 = vmatpush3.bf16.msra.mxu1 %v1694_v58  ;;  %1236 = vmatprep.mubr.msk.f32.mxu0 %vm1638_vm0, %v1636_v0  ;;  %v529_v58 = vmul.f32 %v524_v55, %v222_v47  ;;  %v1846_v47 = vpack.c.bf16 %v135_v46, %v134_v45 }
 0x19c   :  { %1443 = vmatprep.subr.bf16.mxu1 %v1637_v1 }
 0x19f   :  { %1445 = vmatpush3.bf16.msra.mxu1 %v1698_v61 }
 0x1a0   :  { %1446 = vmatprep.subr.bf16.mxu1 %v1637_v1 }
 0x1a3   :  { %1448 = vmatpush3.bf16.msra.mxu1 %v1702_v2  ;;  %v373_v15 = vpop.permute.xlu1 %372 }
 0x1a4   :  { %1449 = vmatprep.subr.bf16.mxu1 %v1637_v1 }
 0x1a7   :  { %1451 = vmatpush3.bf16.msra.mxu1 %v1706_v5  ;;  %v1462_v5 = vpack.c.bf16 %v93_v4, %v92_v3  ;;  %v527_v33 = vpop.permute.xlu1 %526 }
 0x1a8   :  { %1452 = vmatprep.subr.bf16.mxu1 %v1637_v1 }
 0x1a9   :  { %1463 = vmatpush3.bf16.msra.mxu0 %v1462_v5 }
 0x1aa   :  { %1464 = vmatprep.subr.bf16.mxu0 %v1637_v1 }
 0x1ab   :  { %1454 = vmatpush3.bf16.msra.mxu1 %v1710_v8  ;;  %v1465_v8 = vpack.c.bf16 %v95_v7, %v94_v6 }
 0x1ac   :  { %1455 = vmatprep.subr.bf16.mxu1 %v1637_v1 }
 0x1ad   :  { %1466 = vmatpush3.bf16.msra.mxu0 %v1465_v8 }
 0x1ae   :  { %1467 = vmatprep.subr.bf16.mxu0 %v1637_v1 }
 0x1af   :  { %1457 = vmatpush3.bf16.msra.mxu1 %v1714_v11  ;;  %v1468_v11 = vpack.c.bf16 %v97_v10, %v96_v9  ;;  %v620_v10 = vsub.s32 2, %v1754_v40 }
 0x1b0   :  { %1458 = vmatprep.subr.bf16.mxu1 %v1637_v1 }
 0x1b1   :  { %1469 = vmatpush3.bf16.msra.mxu0 %v1468_v11  ;;  %v626_v11 = vsub.s32 3, %v1754_v40 }
 0x1b2   :  { %1470 = vmatprep.subr.bf16.mxu0 %v1637_v1 }
 0x1b3   :  { %1460 = vmatpush3.bf16.msra.mxu1 %v1719_v14  ;;  %v1471_v14 = vpack.c.bf16 %v99_v13, %v98_v12  ;;  %v633_v12 = vsub.s32 4, %v1754_v40  ;;  %v640_v13 = vsub.s32 5, %v1754_v40 }
 0x1b4   :  { %1485 = vmatprep.subr.bf16.mxu1 %v1637_v1 }
 0x1b5   :  { %1472 = vmatpush3.bf16.msra.mxu0 %v1471_v14  ;;  %v627_v14 = vrot.slane %v1757_v42, %v626_v11  ;;  %v634_v16 = vrot.slane %v1757_v42, %v633_v12  ;;  %v641_v18 = vrot.slane %v1757_v42, %v640_v13 }
 0x1b6   :  { %1202 = vmatmul.mubr.f32.vlgmr.msra.gmra.mrb[4].mxu1 %v529_v58  ;;  %1473 = vmatprep.subr.bf16.mxu0 %v1637_v1 }
 0x1b7   :  { %1271 = vmatprep.mubr.msk.f32.mxu1 %vm1638_vm0, %v1636_v0  ;;  %1487 = vmatpush3.bf16.msra.mxu1 %v1827_v30 }
 0x1b8   :  { %1488 = vmatprep.subr.bf16.mxu1 %v1637_v1 }
 0x1b9   :  { %1475 = vmatpush3.bf16.msra.mxu0 %v1474_v17 }
 0x1ba   :  { %1476 = vmatprep.subr.bf16.mxu0 %v1637_v1 }
 0x1bb   :  { %1490 = vmatpush3.bf16.msra.mxu1 %v1830_v32 }
 0x1bc   :  { %1491 = vmatprep.subr.bf16.mxu1 %v1637_v1 }
 0x1bd   :  { %1478 = vmatpush3.bf16.msra.mxu0 %v1477_v20 }
 0x1be   :  { %1479 = vmatprep.subr.bf16.mxu0 %v1637_v1 }
 0x1bf   :  { %1493 = vmatpush3.bf16.msra.mxu1 %v1834_v35 }
 0x1c0   :  { %1494 = vmatprep.subr.bf16.mxu1 %v1637_v1 }
 0x1c1   :  { %1481 = vmatpush3.bf16.msra.mxu0 %v1480_v23 }
 0x1c2   :  { %1482 = vmatprep.subr.bf16.mxu0 %v1637_v1 }
 0x1c3   :  { %1496 = vmatpush3.bf16.msra.mxu1 %v1838_v38 }
 0x1c4   :  { %1497 = vmatprep.subr.bf16.mxu1 %v1637_v1 }
 0x1c5   :  { %1484 = vmatpush3.bf16.msra.mxu0 %v1483_v26  ;;  %v450_v26 = vpop.permute.xlu0 %449 }
 0x1c6   :  { %1509 = vmatprep.subr.bf16.mxu0 %v1637_v1 }
 0x1c7   :  { %1499 = vmatpush3.bf16.msra.mxu1 %v1842_v44 }
 0x1c8   :  { %1500 = vmatprep.subr.bf16.mxu1 %v1637_v1 }
 0x1cb   :  { %1502 = vmatpush3.bf16.msra.mxu1 %v1846_v47 }
 0x1cc   :  { %1503 = vmatprep.subr.bf16.mxu1 %v1637_v1 }
 0x1cf   :  { %1505 = vmatpush3.bf16.msra.mxu1 %v1850_v51 }
 0x1d0   :  { %1506 = vmatprep.subr.bf16.mxu1 %v1637_v1 }
 0x1f6   :  { %v1817_v61 = vpop.f32.mrb[2].mxu0 }
 0x1f7   :  { %v1098_v2 = vpop.f32.mrb[3].mxu0 }
 0x269   :  { %v442_v52 = vpop.f32.mrb[2].mxu1 }
 0x26a   :  { %v600_v53 = vmax.f32 %v1817_v61, %v442_v52  ;;  %v1133_v56 = vpop.f32.mrb[3].mxu1 }
 0x26d   :  { %v519_v57 = vpop.f32.mrb[4].mxu0 }
 0x26e   :  { %v601_v59 = vmax.f32 %v600_v53, %v519_v57  ;;  %v1168_v60 = vpop.f32.mrb[5].mxu0 }
 0x289   :  { %v596_v63 = vpop.f32.mrb[4].mxu1 }
 0x28a   :  { %v602_v55 = vmax.f32 %v601_v59, %v596_v63  ;;  %v1203_v58 = vpop.f32.mrb[5].mxu1 }
 0x28c   :  { %v603_v2 = vsub.f32 %v1817_v61, %v602_v55  ;;  %v606_v3 = vsub.f32 %v442_v52, %v602_v55  ;;  %v609_v4 = vsub.f32 %v519_v57, %v602_v55  ;;  %v612_v5 = vsub.f32 %v596_v63, %v602_v55 }
 0x28d   :  { %v621_v61 = vrot.slane %v1757_v42, %v620_v10 }
 0x28e   :  { %v604_v6 = vmul.f32 1.442695, %v603_v2  ;;  %v607_v7 = vmul.f32 1.442695, %v606_v3  ;;  %v610_v8 = vmul.f32 1.442695, %v609_v4 }
 0x28f   :  { %v613_v9 = vmul.f32 1.442695, %v612_v5 }
 0x290   :  { %1546 = vpow2.f32 %v604_v6 }
 0x291   :  { %1548 = vpow2.f32 %v607_v7 }
 0x292   :  { %1550 = vpow2.f32 %v610_v8 }
 0x293   :  { %1552 = vpow2.f32 %v613_v9 }
 0x29a   :  { %v1547_v17 = vpop.eup %1546 }
 0x29b   :  { %v1549_v19 = vpop.eup %1548  ;;  %v622_v20 = vmul.f32 %v1547_v17, %v621_v61 }
 0x29c   :  { %v1551_v21 = vpop.eup %1550  ;;  %v615_v22 = vadd.f32 %v1549_v19, %v1547_v17  ;;  %v628_v23 = vmul.f32 %v1549_v19, %v627_v14 }
 0x29d   :  { %v1553_v24 = vpop.eup %1552  ;;  %v623_v25 = vmul.f32 %v622_v20, %v1792_v62  ;;  %v635_v27 = vmul.f32 %v1551_v21, %v634_v16  ;;  %v139_v62 = vld [vmem:[#allocation5 + $0x460] sm:$0xff] }
 0x29e   :  { %v616_v28 = vadd.f32 %v1551_v21, %v615_v22  ;;  %v629_v29 = vmul.f32 %v628_v23, %v373_v15  ;;  %v642_v31 = vmul.f32 %v1553_v24, %v641_v18 }
 0x29f   :  { %v636_v37 = vmul.f32 %v635_v27, %v450_v26 }
 0x2a0   :  { %v617_v34 = vadd.f32 %v1553_v24, %v616_v28  ;;  %v630_v36 = vadd.f32 %v629_v29, %v623_v25  ;;  %v643_v39 = vmul.f32 %v642_v31, %v527_v33 }
 0x2a2   :  { %1554 = vrcp.f32 %v617_v34  ;;  %v637_v41 = vadd.f32 %v636_v37, %v630_v36 }
 0x2a4   :  { %v644_v45 = vadd.f32 %v643_v39, %v637_v41 }
 0x2ac   :  { %v1555_v46 = vpop.eup %1554 }
 0x2ad   :  { %v646_v48 = vmul.f32 %v1555_v46, %v644_v45 }
 0x2af   :  { %1237 = vmatmul.mubr.f32.vlgmr.msra.gmra.mrb[6].mxu0 %v646_v48 }
 0x2b0   :  { %1511 = vmatpush3.bf16.msra.mxu0 %v1827_v30  ;;  %1306 = vmatprep.mubr.msk.f32.mxu0 %vm1638_vm0, %v1636_v0  ;;  %v138_v0 = vld [vmem:[#allocation5 + $0x418] sm:$0xff] }
 0x2b1   :  { %1512 = vmatprep.subr.bf16.mxu0 %v1637_v1  ;;  %v1507_v30 = vpack.c.bf16 %v139_v62, %v138_v0 }
 0x2b3   :  { %1508 = vmatpush3.bf16.msra.mxu1 %v1507_v30 }
 0x2b4   :  { %1514 = vmatpush3.bf16.msra.mxu0 %v1830_v32  ;;  %v649_v32 = vsub.s32 1, %v1754_v40 }
 0x2b5   :  { %1515 = vmatprep.subr.bf16.mxu0 %v1637_v1 }
 0x2b6   :  { %v869_v60 = vrot.slane %v1759_v43, %v649_v32 }
 0x2b8   :  { %1517 = vmatpush3.bf16.msra.mxu0 %v1834_v35  ;;  %v650_v35 = vrot.slane %v1757_v42, %v649_v32  ;;  %v874_v42 = vrot.slane %v1784_v54, %v649_v32 }
 0x2b9   :  { %1518 = vmatprep.subr.bf16.mxu0 %v1637_v1 }
 0x2bc   :  { %1520 = vmatpush3.bf16.msra.mxu0 %v1838_v38 }
 0x2bd   :  { %1521 = vmatprep.subr.bf16.mxu0 %v1637_v1 }
 0x2c0   :  { %1523 = vmatpush3.bf16.msra.mxu0 %v1842_v44 }
 0x2c1   :  { %1524 = vmatprep.subr.bf16.mxu0 %v1637_v1 }
 0x2c4   :  { %1526 = vmatpush3.bf16.msra.mxu0 %v1846_v47 }
 0x2c5   :  { %1527 = vmatprep.subr.bf16.mxu0 %v1637_v1 }
 0x2c8   :  { %1529 = vmatpush3.bf16.msra.mxu0 %v1850_v51 }
 0x2c9   :  { %1530 = vmatprep.subr.bf16.mxu0 %v1637_v1 }
 0x2cc   :  { %1532 = vmatpush3.bf16.msra.mxu0 %v1507_v30 }
 0x382   :  { %v717_v38 = vpop.f32.mrb[6].mxu0 }
 0x383   :  { %v718_v44 = vadd.f32 %v717_v38, %v650_v35  ;;  %v1238_v49 = vpop.f32.mrb[7].mxu0 }
 0x385   :  { %v721_v47 = vadd.f32 %v718_v44, %v1684_v50 }
 0x387   :  { %1272 = vmatmul.mubr.f32.vlgmr.msra.gmra.mrb[6].mxu1 %v721_v47 }
 0x45a   :  { %v788_v52 = vpop.f32.mrb[6].mxu1 }
 0x45b   :  { %v792_v53 = vsub.f32 %v721_v47, %v788_v52  ;;  %v1273_v51 = vpop.f32.mrb[7].mxu1 }
 0x45d   :  { %v793_v56 = vmul.f32 %v792_v53, %v792_v53 }
 0x45f   :  { %1307 = vmatmul.mubr.f32.vlgmr.msra.gmra.mrb[8].mxu0 %v793_v56 }
 0x532   :  { %v860_v1 = vpop.f32.mrb[8].mxu0 }
 0x533   :  { %v861_v57 = vadd.f32 1e-05, %v860_v1  ;;  %v1308_v59 = vpop.f32.mrb[9].mxu0 }
 0x535   :  { %1556 = vrsqrt.f32 %v861_v57 }
 0x53f   :  { %v1557_v40 = vpop.eup %1556 }
 0x540   :  { %v865_v63 = vmul.f32 %v1557_v40, %v792_v53 }
 0x542   :  { %v870_v55 = vmul.f32 %v869_v60, %v865_v63 }
 0x544   :  { %v875_v50 = vadd.f32 %v874_v42, %v870_v55 }
 0x546   :  { %876 = vst [vmem:[#allocation7] sm:$0xff] %v875_v50 }
 0x547   :  { %1613 = shalt.err (!%p1610_p6)
}
 0x548   :  { %s1614_s15 = scalar_lea.hbm %s1901_s2, 128 }
 0x549   :  { %p1615_p7 = scmp.ne.s32.totalorder %s1901_s2, %s1614_s15  ;;  %p1618_p8 = scmp.lt.u32.totalorder %s1614_s15, %s1901_s2 }
 0x54b   :  { %p1620_p9 = pnand %p1618_p8, %p1615_p7 }
 0x54d   :  { %1623 = shalt.err (!%p1620_p9)
}
 0x54e   :  { %886 = dma.vmem_to_hbm [thread:$0]  %s884_s11, 128, %s1901_s2, [#allocation4]  }
 0x54f   :  { %1628 = dma.done.wait [#allocation4], 128  }
 0x550   :  { %1629 = vsyncadd [#allocation4], 4294967168 }
 0x551   :  { %890 = vsyncpa [#allocation3], 1 }
 0x552   :  { %891 = vsyncpa [#allocation6], 1 }
 0x553   :  { %892 = vsyncpa [#allocation4], 1 }

</bundles_post_ra>
